<compile_context>
chip_gen: v5e
topology: v5e:2x2
jax: 0.10.0
libtpu: 0.0.40
codegen_flags: <defaults>
</compile_context>

<pallas_src>
import functools

import jax
import jax.numpy as jnp
from jax.experimental import pallas as pl
from jax.experimental.pallas import tpu as pltpu


def _round_up(x: int, m: int) -> int:
    return (x + m - 1) // m * m


def two_layer_kernel(x_ref, w1_ref, b1_ref, w2_ref, b2_ref, o_ref):
    # Layer 1: h1 = sigmoid(x @ W1 + b1).  bf16 MXU inputs, f32 accumulation.
    x_bf16 = x_ref[...].astype(jnp.bfloat16)
    h1 = jnp.dot(x_bf16, w1_ref[...], preferred_element_type=jnp.float32)
    h1 = jax.nn.sigmoid(h1 + b1_ref[...])               # (tile_n, Hp) + (1, Hp)

    # Layer 2: out = sigmoid(h1 @ W2 + b2).  Feed the MXU bf16 again, accumulate f32.
    h2 = jnp.dot(h1.astype(jnp.bfloat16), w2_ref[...],
                 preferred_element_type=jnp.float32)
    o_ref[...] = jax.nn.sigmoid(h2 + b2_ref[...]).astype(o_ref.dtype)
    # TODO(synk): if profiling shows the single EUP slot (two sigmoids per row)
    # saturates before MXU/DMA, split tile_n into 128-256 row sub-chunks with
    # lax.fori_loop(unroll=True) so chunk i's layer-2 matmul hides chunk i+1's sigmoid.


def prepare_params(w1, b1, w2, b2):
    """One-time parameter prep (call once, NOT per forward).

    PyTorch Linear stores W as (out, in); pre-transpose to (in, out) so the kernel
    does plain x @ W, cast weights to bf16 (accumulation stays f32 on the MXU), and
    zero-pad the hidden dim H to a multiple of 128 so the layer-1 output / layer-2
    contraction is lane-dense.

    Correctness invariant: the padded region must be EXACTLY zero.  Padded h1
    columns evaluate to sigmoid(0) = 0.5 and are annihilated by the zero rows of
    W2; uninitialized padding would corrupt valid outputs.
    """
    H, D_in = w1.shape
    D_out = w2.shape[0]
    h_p = _round_up(H, 128)

    w1_t = jnp.zeros((D_in, h_p), jnp.bfloat16).at[:, :H].set(w1.T.astype(jnp.bfloat16))
    b1_p = jnp.zeros((1, h_p), jnp.float32).at[0, :H].set(b1.astype(jnp.float32))
    w2_t = jnp.zeros((h_p, D_out), jnp.bfloat16).at[:H, :].set(w2.T.astype(jnp.bfloat16))
    b2_p = b2.astype(jnp.float32).reshape(1, D_out)
    return w1_t, b1_p, w2_t, b2_p


def _choose_tile_n(N: int) -> int:
    """Batch tile size.

    - multiple of 16 (bf16 sublane packing; also satisfies the 8-row f32 rule),
      unless N itself is tiny (a block equal to the full dim is always legal);
    - >= 2 grid steps once N > 16 so the "parallel" batch axis can be sharded
      across v7x's two TensorCores;
    - capped at 1024 rows: large enough to amortize the ~0.35us per-step overhead
      and sit near the HBM roofline on v5e/v6e, small enough that the f32
      intermediates stay a tiny fraction of v7x's 64 MiB VMEM.
    """
    if N <= 16:
        return N
    return min(1024, _round_up(pl.cdiv(N, 2), 16))


@functools.lru_cache(maxsize=None)
def _forward_fn(tile_n: int, single_buffer_weights: bool):
    def const_spec(shape):
        if single_buffer_weights:
            # Grid-invariant operand: constant index_map, so one VMEM buffer suffices.
            return pl.BlockSpec(shape, lambda i: (0, 0),
                                pipeline_mode=pl.Buffered(buffer_count=1))
        return pl.BlockSpec(shape, lambda i: (0, 0))

    @jax.jit
    def fwd(x, w1_t, b1_p, w2_t, b2_p):
        N, D_in = x.shape
        h_p = w1_t.shape[1]
        D_out = w2_t.shape[1]
        # cdiv grid: last block may run past N; Pallas masks the OOB rows on the
        # output writeback, and the garbage rows never mix with valid rows
        # (computation is purely row-wise), so no batch padding / output slicing.
        grid = (pl.cdiv(N, tile_n),)
        return pl.pallas_call(
            two_layer_kernel,
            out_shape=jax.ShapeDtypeStruct((N, D_out), jnp.float32),
            grid=grid,
            in_specs=[
                pl.BlockSpec((tile_n, D_in), lambda i: (i, 0)),  # x batch tile
                const_spec((D_in, h_p)),                         # W1 (bf16, resident)
                const_spec((1, h_p)),                            # b1 (f32, resident)
                const_spec((h_p, D_out)),                        # W2 (bf16, resident)
                const_spec((1, D_out)),                          # b2 (f32, resident)
            ],
            # Output block last dim == true D_out (full array dim): masked store when
            # D_out < 128, but avoids a separate wrapper slice = one full extra HBM
            # pass over the output.
            out_specs=pl.BlockSpec((tile_n, D_out), lambda i: (i, 0)),
            compiler_params=pltpu.CompilerParams(
                dimension_semantics=("parallel",),   # batch tiles independent -> megacore
                vmem_limit_bytes=48 * 1024 * 1024,   # > default 32 MiB, < v7x's 64 MiB
            ),
        )(x, w1_t, b1_p, w2_t, b2_p)

    return fwd


_WEIGHT_BUFFERING = {"single": None}  # resolved on first call


def two_layer_net(x, w1_t, b1_p, w2_t, b2_p):
    """Forward pass.  x: (N, D_in) float32 (or bf16); params from prepare_params."""
    tile_n = _choose_tile_n(x.shape[0])

    if _WEIGHT_BUFFERING["single"] is None:
        try:
            out = _forward_fn(tile_n, True)(x, w1_t, b1_p, w2_t, b2_p)
            jax.block_until_ready(out)
            _WEIGHT_BUFFERING["single"] = True
            return out
        except Exception:
            # pipeline_mode=pl.Buffered not supported by this pallas_call pipeline:
            # fall back to default double-buffered weight specs (costs one extra
            # VMEM copy of the small bf16 weights, semantics unchanged).
            _WEIGHT_BUFFERING["single"] = False

    return _forward_fn(tile_n, _WEIGHT_BUFFERING["single"])(x, w1_t, b1_p, w2_t, b2_p)


if __name__ == "__main__":
    # Small shapes consistent with the module: D_in=32, H=64, D_out=16, batch=8.
    N, D_in, H, D_out = 8, 32, 64, 16

    key = jax.random.PRNGKey(0)
    kx, kw1, kb1, kw2, kb2 = jax.random.split(key, 5)

    x = jax.random.normal(kx, (N, D_in), dtype=jnp.float32)

    # Deterministic parameter init mimicking nn.Linear's uniform(-1/sqrt(fan_in), ...).
    bound1 = 1.0 / jnp.sqrt(D_in)
    w1 = jax.random.uniform(kw1, (H, D_in), minval=-bound1, maxval=bound1, dtype=jnp.float32)
    b1 = jax.random.uniform(kb1, (H,), minval=-bound1, maxval=bound1, dtype=jnp.float32)

    bound2 = 1.0 / jnp.sqrt(H)
    w2 = jax.random.uniform(kw2, (D_out, H), minval=-bound2, maxval=bound2, dtype=jnp.float32)
    b2 = jax.random.uniform(kb2, (D_out,), minval=-bound2, maxval=bound2, dtype=jnp.float32)

    # One-time parameter preparation (transpose + bf16 cast + H padding, hoisted
    # out of the forward path).
    params = prepare_params(w1, b1, w2, b2)
    params = jax.tree_util.tree_map(jax.block_until_ready, params)

    out = two_layer_net(x, *params)
    out = jax.block_until_ready(out)

    # Pure-JAX f32 reference (same math as the PyTorch forward).  bf16 weights /
    # activations with f32 accumulation: tolerance loosened vs. the old 1e-5 check.
    ref = jax.nn.sigmoid(jax.nn.sigmoid(x @ w1.T + b1) @ w2.T + b2)
    assert out.shape == (N, D_out)
    max_err = float(jnp.max(jnp.abs(out - ref)))
    assert jnp.allclose(out, ref, atol=3e-2, rtol=3e-2), f"max abs err {max_err}"

    print("KERNEL_OK")
</pallas_src>

<mosaic_0001>
module attributes {stable_mosaic.version = 11 : i64} {
  func.func @two_layer_kernel(%arg0: i32, %arg1: memref<8x32xf32, #tpu.memory_space<vmem>>, %arg2: memref<32x128xbf16, #tpu.memory_space<vmem>>, %arg3: memref<1x128xf32, #tpu.memory_space<vmem>>, %arg4: memref<128x16xbf16, #tpu.memory_space<vmem>>, %arg5: memref<1x16xf32, #tpu.memory_space<vmem>>, %arg6: memref<8x16xf32, #tpu.memory_space<vmem>>) attributes {dimension_semantics = [#tpu.dimension_semantics<parallel>], iteration_bounds = array<i64: 1>, scalar_prefetch = 0 : i64, scratch_operands = 0 : i64, tpu.core_type = #tpu.core_type<tc>, window_params = [{transform_indices = @transform_0, window_bounds = array<i64: 8, 32>}, {pipeline_mode = #tpu.pipeline_mode<synchronous>, transform_indices = @transform_1, window_bounds = array<i64: 32, 128>}, {pipeline_mode = #tpu.pipeline_mode<synchronous>, transform_indices = @transform_2, window_bounds = array<i64: 1, 128>}, {pipeline_mode = #tpu.pipeline_mode<synchronous>, transform_indices = @transform_3, window_bounds = array<i64: 128, 16>}, {pipeline_mode = #tpu.pipeline_mode<synchronous>, transform_indices = @transform_4, window_bounds = array<i64: 1, 16>}, {transform_indices = @transform_5, window_bounds = array<i64: 8, 16>}]} {
    %c0 = arith.constant 0 : index
    %c0_0 = arith.constant 0 : index
    %0 = vector.load %arg1[%c0, %c0_0] : memref<8x32xf32, #tpu.memory_space<vmem>>, vector<8x32xf32>
    %1 = arith.truncf %0 : vector<8x32xf32> to vector<8x32xbf16>
    %c0_1 = arith.constant 0 : index
    %c0_2 = arith.constant 0 : index
    %2 = vector.load %arg2[%c0_1, %c0_2] : memref<32x128xbf16, #tpu.memory_space<vmem>>, vector<32x128xbf16>
    %cst = arith.constant dense<0.000000e+00> : vector<8x128xf32>
    %3 = tpu.matmul %1, %2, %cst {dimension_numbers = #tpu.dot_dimension_numbers<[1], [0], [0], [1], [0, 0, 1, 1], [], []>} : vector<8x32xbf16>, vector<32x128xbf16>, vector<8x128xf32> -> vector<8x128xf32>
    %c0_3 = arith.constant 0 : index
    %c0_4 = arith.constant 0 : index
    %4 = vector.load %arg3[%c0_3, %c0_4] : memref<1x128xf32, #tpu.memory_space<vmem>>, vector<1x128xf32>
    %5 = vector.broadcast %4 : vector<1x128xf32> to vector<8x128xf32>
    %6 = arith.addf %3, %5 : vector<8x128xf32>
    %7 = arith.negf %6 : vector<8x128xf32>
    %8 = math.exp %7 : vector<8x128xf32>
    %cst_5 = arith.constant 1.000000e+00 : f32
    %9 = vector.broadcast %cst_5 : f32 to vector<8x128xf32>
    %10 = arith.addf %9, %8 : vector<8x128xf32>
    %11 = arith.divf %9, %10 : vector<8x128xf32>
    %12 = arith.truncf %11 : vector<8x128xf32> to vector<8x128xbf16>
    %c0_6 = arith.constant 0 : index
    %c0_7 = arith.constant 0 : index
    %13 = vector.load %arg4[%c0_6, %c0_7] : memref<128x16xbf16, #tpu.memory_space<vmem>>, vector<128x16xbf16>
    %cst_8 = arith.constant dense<0.000000e+00> : vector<8x16xf32>
    %14 = tpu.matmul %12, %13, %cst_8 {dimension_numbers = #tpu.dot_dimension_numbers<[1], [0], [0], [1], [0, 0, 1, 1], [], []>} : vector<8x128xbf16>, vector<128x16xbf16>, vector<8x16xf32> -> vector<8x16xf32>
    %c0_9 = arith.constant 0 : index
    %c0_10 = arith.constant 0 : index
    %15 = vector.load %arg5[%c0_9, %c0_10] : memref<1x16xf32, #tpu.memory_space<vmem>>, vector<1x16xf32>
    %16 = vector.broadcast %15 : vector<1x16xf32> to vector<8x16xf32>
    %17 = arith.addf %14, %16 : vector<8x16xf32>
    %18 = arith.negf %17 : vector<8x16xf32>
    %19 = math.exp %18 : vector<8x16xf32>
    %cst_11 = arith.constant 1.000000e+00 : f32
    %20 = vector.broadcast %cst_11 : f32 to vector<8x16xf32>
    %21 = arith.addf %20, %19 : vector<8x16xf32>
    %22 = arith.divf %20, %21 : vector<8x16xf32>
    %c0_12 = arith.constant 0 : index
    %c0_13 = arith.constant 0 : index
    %23 = vector.load %arg6[%c0_12, %c0_13] : memref<8x16xf32, #tpu.memory_space<vmem>>, vector<8x16xf32>
    tpu.vector_store %arg6[%c0_12, %c0_13], %22 {strides = array<i32>} : memref<8x16xf32, #tpu.memory_space<vmem>>, vector<8x16xf32>,
    return
  }
  func.func @transform_0(%arg0: i32) -> (i32, i32) {
    %c0_i32 = arith.constant 0 : i32
    %c0_i32_0 = arith.constant 0 : i32
    return %arg0, %c0_i32 : i32, i32
  }
  func.func @transform_1(%arg0: i32) -> (i32, i32) {
    %c0_i32 = arith.constant 0 : i32
    %c0_i32_0 = arith.constant 0 : i32
    %c0_i32_1 = arith.constant 0 : i32
    return %c0_i32, %c0_i32_0 : i32, i32
  }
  func.func @transform_2(%arg0: i32) -> (i32, i32) {
    %c0_i32 = arith.constant 0 : i32
    %c0_i32_0 = arith.constant 0 : i32
    %c0_i32_1 = arith.constant 0 : i32
    return %c0_i32, %c0_i32_0 : i32, i32
  }
  func.func @transform_3(%arg0: i32) -> (i32, i32) {
    %c0_i32 = arith.constant 0 : i32
    %c0_i32_0 = arith.constant 0 : i32
    %c0_i32_1 = arith.constant 0 : i32
    return %c0_i32, %c0_i32_0 : i32, i32
  }
  func.func @transform_4(%arg0: i32) -> (i32, i32) {
    %c0_i32 = arith.constant 0 : i32
    %c0_i32_0 = arith.constant 0 : i32
    %c0_i32_1 = arith.constant 0 : i32
    return %c0_i32, %c0_i32_0 : i32, i32
  }
  func.func @transform_5(%arg0: i32) -> (i32, i32) {
    %c0_i32 = arith.constant 0 : i32
    %c0_i32_0 = arith.constant 0 : i32
    return %arg0, %c0_i32 : i32, i32
  }
}

module attributes {stable_mosaic.version = 11 : i64} {
  func.func @two_layer_kernel(%arg0: i32, %arg1: memref<8x32xf32, #tpu.memory_space<vmem>>, %arg2: memref<32x128xbf16, #tpu.memory_space<vmem>>, %arg3: memref<1x128xf32, #tpu.memory_space<vmem>>, %arg4: memref<128x16xbf16, #tpu.memory_space<vmem>>, %arg5: memref<1x16xf32, #tpu.memory_space<vmem>>, %arg6: memref<8x16xf32, #tpu.memory_space<vmem>>) attributes {dimension_semantics = [#tpu.dimension_semantics<parallel>], iteration_bounds = array<i64: 1>, scalar_prefetch = 0 : i64, scratch_operands = 0 : i64, tpu.core_type = #tpu.core_type<tc>, window_params = [{transform_indices = @transform_0, window_bounds = array<i64: 8, 32>}, {pipeline_mode = #tpu.pipeline_mode<synchronous>, transform_indices = @transform_1, window_bounds = array<i64: 32, 128>}, {pipeline_mode = #tpu.pipeline_mode<synchronous>, transform_indices = @transform_2, window_bounds = array<i64: 1, 128>}, {pipeline_mode = #tpu.pipeline_mode<synchronous>, transform_indices = @transform_3, window_bounds = array<i64: 128, 16>}, {pipeline_mode = #tpu.pipeline_mode<synchronous>, transform_indices = @transform_4, window_bounds = array<i64: 1, 16>}, {transform_indices = @transform_5, window_bounds = array<i64: 8, 16>}]} {
    %c0 = arith.constant 0 : index
    %c0_0 = arith.constant 0 : index
    %0 = vector.load %arg1[%c0, %c0_0] : memref<8x32xf32, #tpu.memory_space<vmem>>, vector<8x32xf32>
    %1 = arith.truncf %0 : vector<8x32xf32> to vector<8x32xbf16>
    %c0_1 = arith.constant 0 : index
    %c0_2 = arith.constant 0 : index
    %2 = vector.load %arg2[%c0_1, %c0_2] : memref<32x128xbf16, #tpu.memory_space<vmem>>, vector<32x128xbf16>
    %cst = arith.constant dense<0.000000e+00> : vector<8x128xf32>
    %3 = tpu.matmul %1, %2, %cst {dimension_numbers = #tpu.dot_dimension_numbers<[1], [0], [0], [1], [0, 0, 1, 1], [], []>} : vector<8x32xbf16>, vector<32x128xbf16>, vector<8x128xf32> -> vector<8x128xf32>
    %c0_3 = arith.constant 0 : index
    %c0_4 = arith.constant 0 : index
    %4 = vector.load %arg3[%c0_3, %c0_4] : memref<1x128xf32, #tpu.memory_space<vmem>>, vector<1x128xf32>
    %5 = vector.broadcast %4 : vector<1x128xf32> to vector<8x128xf32>
    %6 = arith.addf %3, %5 : vector<8x128xf32>
    %7 = arith.negf %6 : vector<8x128xf32>
    %8 = math.exp %7 : vector<8x128xf32>
    %cst_5 = arith.constant 1.000000e+00 : f32
    %9 = vector.broadcast %cst_5 : f32 to vector<8x128xf32>
    %10 = arith.addf %9, %8 : vector<8x128xf32>
    %11 = arith.divf %9, %10 : vector<8x128xf32>
    %12 = arith.truncf %11 : vector<8x128xf32> to vector<8x128xbf16>
    %c0_6 = arith.constant 0 : index
    %c0_7 = arith.constant 0 : index
    %13 = vector.load %arg4[%c0_6, %c0_7] : memref<128x16xbf16, #tpu.memory_space<vmem>>, vector<128x16xbf16>
    %cst_8 = arith.constant dense<0.000000e+00> : vector<8x16xf32>
    %14 = tpu.matmul %12, %13, %cst_8 {dimension_numbers = #tpu.dot_dimension_numbers<[1], [0], [0], [1], [0, 0, 1, 1], [], []>} : vector<8x128xbf16>, vector<128x16xbf16>, vector<8x16xf32> -> vector<8x16xf32>
    %c0_9 = arith.constant 0 : index
    %c0_10 = arith.constant 0 : index
    %15 = vector.load %arg5[%c0_9, %c0_10] : memref<1x16xf32, #tpu.memory_space<vmem>>, vector<1x16xf32>
    %16 = vector.broadcast %15 : vector<1x16xf32> to vector<8x16xf32>
    %17 = arith.addf %14, %16 : vector<8x16xf32>
    %18 = arith.negf %17 : vector<8x16xf32>
    %19 = math.exp %18 : vector<8x16xf32>
    %cst_11 = arith.constant 1.000000e+00 : f32
    %20 = vector.broadcast %cst_11 : f32 to vector<8x16xf32>
    %21 = arith.addf %20, %19 : vector<8x16xf32>
    %22 = arith.divf %20, %21 : vector<8x16xf32>
    %c0_12 = arith.constant 0 : index
    %c0_13 = arith.constant 0 : index
    %23 = vector.load %arg6[%c0_12, %c0_13] : memref<8x16xf32, #tpu.memory_space<vmem>>, vector<8x16xf32>
    tpu.vector_store %arg6[%c0_12, %c0_13], %22 {strides = array<i32>} : memref<8x16xf32, #tpu.memory_space<vmem>>, vector<8x16xf32>,
    return
  }
  func.func @transform_0(%arg0: i32) -> (i32, i32) {
    %c0_i32 = arith.constant 0 : i32
    %c0_i32_0 = arith.constant 0 : i32
    return %arg0, %c0_i32 : i32, i32
  }
  func.func @transform_1(%arg0: i32) -> (i32, i32) {
    %c0_i32 = arith.constant 0 : i32
    %c0_i32_0 = arith.constant 0 : i32
    %c0_i32_1 = arith.constant 0 : i32
    return %c0_i32, %c0_i32_0 : i32, i32
  }
  func.func @transform_2(%arg0: i32) -> (i32, i32) {
    %c0_i32 = arith.constant 0 : i32
    %c0_i32_0 = arith.constant 0 : i32
    %c0_i32_1 = arith.constant 0 : i32
    return %c0_i32, %c0_i32_0 : i32, i32
  }
  func.func @transform_3(%arg0: i32) -> (i32, i32) {
    %c0_i32 = arith.constant 0 : i32
    %c0_i32_0 = arith.constant 0 : i32
    %c0_i32_1 = arith.constant 0 : i32
    return %c0_i32, %c0_i32_0 : i32, i32
  }
  func.func @transform_4(%arg0: i32) -> (i32, i32) {
    %c0_i32 = arith.constant 0 : i32
    %c0_i32_0 = arith.constant 0 : i32
    %c0_i32_1 = arith.constant 0 : i32
    return %c0_i32, %c0_i32_0 : i32, i32
  }
  func.func @transform_5(%arg0: i32) -> (i32, i32) {
    %c0_i32 = arith.constant 0 : i32
    %c0_i32_0 = arith.constant 0 : i32
    return %arg0, %c0_i32 : i32, i32
  }
}

</mosaic_0001>

<bundles_post_ra>
// kernel: fwd.1
= control target key start
LH: loop header
LB: loop body
LE: loop exit
PB: predicated region body
PF: predicated region fallthrough
CT: control target
= control target key end

     0   :  { %s362_s0 = inlined_call_operand.vmem [shape: f32[8,32], index: 0, kind: input, shape index: {}]   ;;  %s363_s1 = inlined_call_operand.vmem [shape: bf16[32,128], index: 1, kind: input, shape index: {}]   ;;  %s364_s2 = inlined_call_operand.vmem [shape: f32[1,128], index: 2, kind: input, shape index: {}]   ;;  %s365_s3 = inlined_call_operand.vmem [shape: bf16[128,16], index: 3, kind: input, shape index: {}]   ;;  %s366_s4 = inlined_call_operand.vmem [shape: f32[1,16], index: 4, kind: input, shape index: {}]   ;;  %s367_s5 = inlined_call_operand.hbm [shape: f32[8,16], index: 5, kind: output, shape index: {}]  }
   0x1   :  { %v243_v0 = vld [vmem:[%s363_s1 + $0x8] sm:$0xff]  ;;  %v242_v1 = vld [vmem:[%s363_s1] sm:$0xff] }
   0x2   :  { %54 = vmatpush.bf16.msra.mxu0 %v243_v0  ;;  %v22_v2 = vld [vmem:[%s362_s0] sm:$0xff] }
   0x3   :  { %10 = vsyncpa [#allocation3], 0  ;;  %v23_v3 = vpack.c.bf16 %v22_v2, %v22_v2  ;;  %vm44_vm0 = vcmask 261120   ;;  %v251_v4 = vld [vmem:[%s365_s3 + $0x38] sm:$0xff]  ;;  %v250_v5 = vld [vmem:[%s365_s3 + $0x30] sm:$0xff]  ;;  %s289_s15 = smov [#allocation2]  }
   0x4   :  { %149 = vmatpush.bf16.msra.mxu1 %v251_v4  ;;  %v249_v6 = vld [vmem:[%s365_s3 + $0x28] sm:$0xff]  ;;  %v248_v7 = vld [vmem:[%s365_s3 + $0x20] sm:$0xff]  ;;  %v247_v8 = vld [vmem:[%s365_s3 + $0x18] sm:$0xff]  ;;  %s188_s16 = sshll.u32 %s289_s15, 4  ;;  %vm181_vm8 = vcmask 130048   ;;  %s189_s16 = int_to_ptr.vmem [resolvable:$true] %s188_s16 }
   0x5   :  { %v246_v9 = vld [vmem:[%s365_s3 + $0x10] sm:$0xff]  ;;  %v245_v10 = vld [vmem:[%s365_s3 + $0x8] sm:$0xff]  ;;  %v244_v11 = vld [vmem:[%s365_s3] sm:$0xff] }
   0x6   :  { %55 = vmatpush.bf16.msra.mxu0 %v242_v1  ;;  %v253_v12 = vld [vmem:[%s364_s2] ss:$0 sm:$0xff] }
   0x7   :  { %v254_v30 = vld [vmem:[%s366_s4] ss:$0 sm:$0xff]  ;;  %s190_s4 = sshll.u32 %s367_s5, 4  ;;  %s191_s4 = int_to_ptr.hbm [resolvable:$true] %s190_s4 }
   0x8   :  { %150 = vmatpush.bf16.msra.mxu1 %v250_v5 }
   0x9   :  { %207 = vmatmul.msk.bf16.vlgmr.msra.gmra.mxu0 %vm44_vm0, %v23_v3 }
   0xc   :  { %151 = vmatpush.bf16.msra.mxu1 %v249_v6 }
  0x10   :  { %152 = vmatpush.bf16.msra.mxu1 %v248_v7 }
  0x14   :  { %153 = vmatpush.bf16.msra.mxu1 %v247_v8 }
  0x18   :  { %154 = vmatpush.bf16.msra.mxu1 %v246_v9 }
  0x1c   :  { %155 = vmatpush.bf16.msra.mxu1 %v245_v10 }
  0x20   :  { %156 = vmatpush.bf16.msra.mxu1 %v244_v11 }
  0x86   :  { %v57_v13 = vpop.f32.mrf.mxu0 }
  0x87   :  { %v58_v14 = vadd.f32 %v253_v12, %v57_v13 }
  0x89   :  { %v208_v15 = vmul.f32 -1.442695, %v58_v14 }
  0x8b   :  { %255 = vpow2.f32 %v208_v15 }
  0x8e   :  { %v59_v16 = vpop.f32.mrf.mxu0 }
  0x91   :  { %v256_v17 = vpop.eup %255 }
  0x92   :  { %v64_v18 = vadd.f32 1.0, %v256_v17 }
  0x94   :  { %257 = vrcp.f32 %v64_v18  ;;  %v76_v22 = vand.u32 2147483648, %v64_v18  ;;  %v74_v24 = vand.u32 2147483647, %v64_v18  ;;  %vm70_vm2 = vweird.f32 %v64_v18 }
  0x96   :  { %v77_v26 = vor.u32 1.1754944e-38, %v76_v22  ;;  %vm75_vm4 = vcmp.eq.f32.partialorder %v74_v24, 8.507059e+37 }
  0x9a   :  { %v258_v19 = vpop.eup %257 }
  0x9b   :  { %v66_v20 = vmul.f32 %v258_v19, %v64_v18  ;;  %vm71_vm1 = vweird.f32 %v258_v19 }
  0x9c   :  { %vm72_vm3 = vmor %vm70_vm2, %vm71_vm1 }
  0x9d   :  { %v67_v21 = vsub.f32 1.0, %v66_v20 }
  0x9f   :  { %v68_v23 = vmul.f32 %v258_v19, %v67_v21 }
  0xa1   :  { %v69_v25 = vadd.f32 %v258_v19, %v68_v23 }
  0xa3   :  { %v73_v27 = vsel %vm72_vm3, %v258_v19, %v69_v25 }
  0xa4   :  { %v78_v28 = vsel %vm75_vm4, %v77_v26, %v73_v27 }
  0xa5   :  { %v80_v29 = vpack.c.bf16 %v78_v28, %v78_v28 }
  0xa7   :  { %157 = vmatmul.bf16.vlgmr.msra.gmra.mxu1 %v80_v29 }
 0x124   :  { %v158_v31 = vpop.f32.mrf.mxu1 }
 0x125   :  { %v159_v32 = vadd.f32 %v254_v30, %v158_v31 }
 0x127   :  { %v241_v33 = vmul.f32 -1.442695, %v159_v32 }
 0x129   :  { %259 = vpow2.f32 %v241_v33 }
 0x12c   :  { %v160_v34 = vpop.f32.mrf.mxu1 }
 0x12f   :  { %v260_v35 = vpop.eup %259 }
 0x130   :  { %v165_v36 = vadd.f32 1.0, %v260_v35 }
 0x132   :  { %261 = vrcp.f32 %v165_v36  ;;  %v177_v40 = vand.u32 2147483648, %v165_v36  ;;  %v175_v42 = vand.u32 2147483647, %v165_v36  ;;  %vm171_vm6 = vweird.f32 %v165_v36 }
 0x134   :  { %v178_v44 = vor.u32 1.1754944e-38, %v177_v40  ;;  %vm176_vm9 = vcmp.eq.f32.partialorder %v175_v42, 8.507059e+37 }
 0x138   :  { %v262_v37 = vpop.eup %261 }
 0x139   :  { %v167_v38 = vmul.f32 %v262_v37, %v165_v36  ;;  %vm172_vm5 = vweird.f32 %v262_v37 }
 0x13a   :  { %vm173_vm7 = vmor %vm171_vm6, %vm172_vm5 }
 0x13b   :  { %v168_v39 = vsub.f32 1.0, %v167_v38 }
 0x13d   :  { %v169_v41 = vmul.f32 %v262_v37, %v168_v39 }
 0x13f   :  { %v170_v43 = vadd.f32 %v262_v37, %v169_v41 }
 0x141   :  { %v174_v45 = vsel %vm173_vm7, %v262_v37, %v170_v43 }
 0x142   :  { %v179_v46 = vsel %vm176_vm9, %v178_v44, %v174_v45 }
 0x143   :  { %182 = vst.msk [vmem:[#allocation2] sm:$0xff] %vm181_vm8, %v179_v46 }
 0x144   :  { %193 = dma.vmem_to_hbm [thread:$0]  %s189_s16, 128, %s191_s4, [#allocation3]  }
 0x145   :  { %287 = dma.done.wait [#allocation3], 128  }
 0x146   :  { %288 = vsyncadd [#allocation3], 4294967168 }
 0x147   :  { %198 = vsyncpa [#allocation3], 1 }

// kernel: fwd.1
= control target key start
LH: loop header
LB: loop body
LE: loop exit
PB: predicated region body
PF: predicated region fallthrough
CT: control target
= control target key end

     0   :  { %s362_s0 = inlined_call_operand.vmem [shape: f32[8,32], index: 0, kind: input, shape index: {}]   ;;  %s363_s1 = inlined_call_operand.vmem [shape: bf16[32,128], index: 1, kind: input, shape index: {}]   ;;  %s364_s2 = inlined_call_operand.vmem [shape: f32[1,128], index: 2, kind: input, shape index: {}]   ;;  %s365_s3 = inlined_call_operand.vmem [shape: bf16[128,16], index: 3, kind: input, shape index: {}]   ;;  %s366_s4 = inlined_call_operand.vmem [shape: f32[1,16], index: 4, kind: input, shape index: {}]   ;;  %s367_s5 = inlined_call_operand.hbm [shape: f32[8,16], index: 5, kind: output, shape index: {}]  }
   0x1   :  { %v243_v0 = vld [vmem:[%s363_s1 + $0x8] sm:$0xff]  ;;  %v242_v1 = vld [vmem:[%s363_s1] sm:$0xff] }
   0x2   :  { %54 = vmatpush.bf16.msra.mxu0 %v243_v0  ;;  %v22_v2 = vld [vmem:[%s362_s0] sm:$0xff] }
   0x3   :  { %10 = vsyncpa [#allocation3], 0  ;;  %v23_v3 = vpack.c.bf16 %v22_v2, %v22_v2  ;;  %vm44_vm0 = vcmask 261120   ;;  %v251_v4 = vld [vmem:[%s365_s3 + $0x38] sm:$0xff]  ;;  %v250_v5 = vld [vmem:[%s365_s3 + $0x30] sm:$0xff]  ;;  %s289_s15 = smov [#allocation2]  }
   0x4   :  { %149 = vmatpush.bf16.msra.mxu1 %v251_v4  ;;  %v249_v6 = vld [vmem:[%s365_s3 + $0x28] sm:$0xff]  ;;  %v248_v7 = vld [vmem:[%s365_s3 + $0x20] sm:$0xff]  ;;  %v247_v8 = vld [vmem:[%s365_s3 + $0x18] sm:$0xff]  ;;  %s188_s16 = sshll.u32 %s289_s15, 4  ;;  %vm181_vm8 = vcmask 130048   ;;  %s189_s16 = int_to_ptr.vmem [resolvable:$true] %s188_s16 }
   0x5   :  { %v246_v9 = vld [vmem:[%s365_s3 + $0x10] sm:$0xff]  ;;  %v245_v10 = vld [vmem:[%s365_s3 + $0x8] sm:$0xff]  ;;  %v244_v11 = vld [vmem:[%s365_s3] sm:$0xff] }
   0x6   :  { %55 = vmatpush.bf16.msra.mxu0 %v242_v1  ;;  %v253_v12 = vld [vmem:[%s364_s2] ss:$0 sm:$0xff] }
   0x7   :  { %v254_v30 = vld [vmem:[%s366_s4] ss:$0 sm:$0xff]  ;;  %s190_s4 = sshll.u32 %s367_s5, 4  ;;  %s191_s4 = int_to_ptr.hbm [resolvable:$true] %s190_s4 }
   0x8   :  { %150 = vmatpush.bf16.msra.mxu1 %v250_v5 }
   0x9   :  { %207 = vmatmul.msk.bf16.vlgmr.msra.gmra.mxu0 %vm44_vm0, %v23_v3 }
   0xc   :  { %151 = vmatpush.bf16.msra.mxu1 %v249_v6 }
  0x10   :  { %152 = vmatpush.bf16.msra.mxu1 %v248_v7 }
  0x14   :  { %153 = vmatpush.bf16.msra.mxu1 %v247_v8 }
  0x18   :  { %154 = vmatpush.bf16.msra.mxu1 %v246_v9 }
  0x1c   :  { %155 = vmatpush.bf16.msra.mxu1 %v245_v10 }
  0x20   :  { %156 = vmatpush.bf16.msra.mxu1 %v244_v11 }
  0x86   :  { %v57_v13 = vpop.f32.mrf.mxu0 }
  0x87   :  { %v58_v14 = vadd.f32 %v253_v12, %v57_v13 }
  0x89   :  { %v208_v15 = vmul.f32 -1.442695, %v58_v14 }
  0x8b   :  { %255 = vpow2.f32 %v208_v15 }
  0x8e   :  { %v59_v16 = vpop.f32.mrf.mxu0 }
  0x91   :  { %v256_v17 = vpop.eup %255 }
  0x92   :  { %v64_v18 = vadd.f32 1.0, %v256_v17 }
  0x94   :  { %257 = vrcp.f32 %v64_v18  ;;  %v76_v22 = vand.u32 2147483648, %v64_v18  ;;  %v74_v24 = vand.u32 2147483647, %v64_v18  ;;  %vm70_vm2 = vweird.f32 %v64_v18 }
  0x96   :  { %v77_v26 = vor.u32 1.1754944e-38, %v76_v22  ;;  %vm75_vm4 = vcmp.eq.f32.partialorder %v74_v24, 8.507059e+37 }
  0x9a   :  { %v258_v19 = vpop.eup %257 }
  0x9b   :  { %v66_v20 = vmul.f32 %v258_v19, %v64_v18  ;;  %vm71_vm1 = vweird.f32 %v258_v19 }
  0x9c   :  { %vm72_vm3 = vmor %vm70_vm2, %vm71_vm1 }
  0x9d   :  { %v67_v21 = vsub.f32 1.0, %v66_v20 }
  0x9f   :  { %v68_v23 = vmul.f32 %v258_v19, %v67_v21 }
  0xa1   :  { %v69_v25 = vadd.f32 %v258_v19, %v68_v23 }
  0xa3   :  { %v73_v27 = vsel %vm72_vm3, %v258_v19, %v69_v25 }
  0xa4   :  { %v78_v28 = vsel %vm75_vm4, %v77_v26, %v73_v27 }
  0xa5   :  { %v80_v29 = vpack.c.bf16 %v78_v28, %v78_v28 }
  0xa7   :  { %157 = vmatmul.bf16.vlgmr.msra.gmra.mxu1 %v80_v29 }
 0x124   :  { %v158_v31 = vpop.f32.mrf.mxu1 }
 0x125   :  { %v159_v32 = vadd.f32 %v254_v30, %v158_v31 }
 0x127   :  { %v241_v33 = vmul.f32 -1.442695, %v159_v32 }
 0x129   :  { %259 = vpow2.f32 %v241_v33 }
 0x12c   :  { %v160_v34 = vpop.f32.mrf.mxu1 }
 0x12f   :  { %v260_v35 = vpop.eup %259 }
 0x130   :  { %v165_v36 = vadd.f32 1.0, %v260_v35 }
 0x132   :  { %261 = vrcp.f32 %v165_v36  ;;  %v177_v40 = vand.u32 2147483648, %v165_v36  ;;  %v175_v42 = vand.u32 2147483647, %v165_v36  ;;  %vm171_vm6 = vweird.f32 %v165_v36 }
 0x134   :  { %v178_v44 = vor.u32 1.1754944e-38, %v177_v40  ;;  %vm176_vm9 = vcmp.eq.f32.partialorder %v175_v42, 8.507059e+37 }
 0x138   :  { %v262_v37 = vpop.eup %261 }
 0x139   :  { %v167_v38 = vmul.f32 %v262_v37, %v165_v36  ;;  %vm172_vm5 = vweird.f32 %v262_v37 }
 0x13a   :  { %vm173_vm7 = vmor %vm171_vm6, %vm172_vm5 }
 0x13b   :  { %v168_v39 = vsub.f32 1.0, %v167_v38 }
 0x13d   :  { %v169_v41 = vmul.f32 %v262_v37, %v168_v39 }
 0x13f   :  { %v170_v43 = vadd.f32 %v262_v37, %v169_v41 }
 0x141   :  { %v174_v45 = vsel %vm173_vm7, %v262_v37, %v170_v43 }
 0x142   :  { %v179_v46 = vsel %vm176_vm9, %v178_v44, %v174_v45 }
 0x143   :  { %182 = vst.msk [vmem:[#allocation2] sm:$0xff] %vm181_vm8, %v179_v46 }
 0x144   :  { %193 = dma.vmem_to_hbm [thread:$0]  %s189_s16, 128, %s191_s4, [#allocation3]  }
 0x145   :  { %287 = dma.done.wait [#allocation3], 128  }
 0x146   :  { %288 = vsyncadd [#allocation3], 4294967168 }
 0x147   :  { %198 = vsyncpa [#allocation3], 1 }

</bundles_post_ra>
